<compile_context>
chip_gen: v6e
topology: v6e:2x2x1
jax: 0.10.0
libtpu: 0.0.40
codegen_flags: <defaults>
</compile_context>

<pallas_src>
import jax
import jax.numpy as jnp
from jax.experimental import pallas as pl
from jax.experimental.pallas import tpu as pltpu


def _round_up(x, m):
    return ((x + m - 1) // m) * m


def _bbox_head_kernel(x_ref, w_ref, b_ref, o_ref):
    # x_ref: (C_in, hw_tile)   one batch element, one tile of pixels (x dtype)
    # w_ref: (C_out, C_in)     f32, constant block index -> VMEM resident
    # b_ref: (C_out, 1)        f32, resident
    # o_ref: (hw_tile, C_out)  pixel-major output block
    x = x_ref[...].astype(jnp.float32)            # upcast rides idle VPU slots
    acc = jnp.dot(w_ref[...], x, preferred_element_type=jnp.float32)
    acc = acc + b_ref[...]                        # f32 bias add
    # Transpose the small (C_out, hw_tile) result on the (idle) XLU and store
    # pixel-major so no post-kernel XLA transpose is needed.
    o_ref[...] = jnp.transpose(acc, (1, 0)).astype(o_ref.dtype)


def bbox_head_forward(x_nchw, weight, bias, num_anchors, *,
                      target_block_bytes=2 * 1024 * 1024, min_grid_steps=4):
    """1x1-conv detection head (RetinaFace BboxHead).

    x_nchw: (B, C_in, H, W) activations. f32 or bf16 -- for the bf16 HBM
            saving to be real, the *producer* layer must emit bf16; do not
            cast here. Accumulation and bias add are always f32.
    weight: (C_out, C_in)   squeezed 1x1 conv kernel, C_out = num_anchors*4.
    bias:   (C_out,)
    Returns (B, H*W*num_anchors, 4), matching
      conv1x1(x).permute(0, 2, 3, 1).contiguous().view(B, -1, 4).
    """
    B, C_in, H, W = x_nchw.shape
    C_out = weight.shape[0]
    assert C_out == num_anchors * 4
    HW = H * W

    x = x_nchw.reshape(B, C_in, HW)                  # free view of NCHW
    w = weight.astype(jnp.float32)                   # tiny; stays f32 always
    b = bias.astype(jnp.float32).reshape(C_out, 1)

    # --- tile selection: size the per-step x DMA by bytes, not pixels -------
    itemsize = x.dtype.itemsize
    target_pixels = max(128, target_block_bytes // (C_in * itemsize))
    hw_tile = _round_up(min(HW, target_pixels), 128)
    # Keep >= min_grid_steps grid steps so both v7x TensorCores get work on
    # small pyramid levels (no-op on single-TC v5e/v6e).
    while B * pl.cdiv(HW, hw_tile) < min_grid_steps and hw_tile > 128:
        hw_tile = _round_up(hw_tile // 2, 128)
    n_hw = pl.cdiv(HW, hw_tile)          # ragged tail -> masked writeback

    flops = 2 * B * HW * C_in * C_out
    bytes_accessed = (
        B * HW * C_in * itemsize          # stream x once
        + C_out * C_in * 4                # f32 weight (resident)
        + C_out * 4                       # f32 bias
        + B * HW * C_out * itemsize       # output, written once
    )

    out = pl.pallas_call(
        _bbox_head_kernel,
        out_shape=jax.ShapeDtypeStruct((B, HW, C_out), x.dtype),
        grid_spec=pltpu.PrefetchScalarGridSpec(
            num_scalar_prefetch=0,
            grid=(B, n_hw),
            in_specs=[
                # Batch dim squeezed (None); pixel axis tiled, channels whole.
                pl.BlockSpec((None, C_in, hw_tile), lambda bi, j: (bi, 0, j)),
                # Constant block index -> fetched once, never re-DMA'd.
                pl.BlockSpec((C_out, C_in), lambda bi, j: (0, 0)),
                pl.BlockSpec((C_out, 1), lambda bi, j: (0, 0)),
            ],
            out_specs=pl.BlockSpec(
                (None, hw_tile, C_out), lambda bi, j: (bi, j, 0)),
        ),
        compiler_params=pltpu.CompilerParams(
            dimension_semantics=("parallel", "parallel")),
        cost_estimate=pl.CostEstimate(
            flops=flops, transcendentals=0, bytes_accessed=bytes_accessed),
    )(x, w, b)

    # (B, HW, num_anchors*4) -> (B, HW*num_anchors, 4): free contiguous view,
    # identical to permute(0, 2, 3, 1).contiguous().view(B, -1, 4).
    return out.reshape(B, HW * num_anchors, 4)


if __name__ == "__main__":
    # Small shapes consistent with the module (inchannels shrunk from 512).
    num_anchors = 3
    C_out = num_anchors * 4
    B, C_in = 2, 64

    k1, k2, k3, k4 = jax.random.split(jax.random.PRNGKey(0), 4)
    weight = jax.random.normal(k2, (C_out, C_in), dtype=jnp.float32) * 0.05
    bias = jax.random.normal(k3, (C_out,), dtype=jnp.float32) * 0.01

    def reference(xf32):
        Bb, _, Hh, Ww = xf32.shape
        r = jnp.einsum("bchw,oc->bhwo", xf32, weight) + bias
        return r.reshape(Bb, Hh * Ww * num_anchors, 4)

    # Case 1: H=W=16 (HW=256, even tiling). f32 path: exact semantics check.
    H = W = 16
    x = jax.random.normal(k1, (B, C_in, H, W), dtype=jnp.float32)
    out_f32 = jax.block_until_ready(
        bbox_head_forward(x, weight, bias, num_anchors))
    ref = reference(x)
    assert out_f32.shape == (B, H * W * num_anchors, 4)
    assert jnp.allclose(out_f32, ref, atol=1e-4, rtol=1e-4)

    # bf16-streaming path: x in bf16, weight kept f32, f32 accumulate/bias.
    out_bf16 = jax.block_until_ready(
        bbox_head_forward(x.astype(jnp.bfloat16), weight, bias, num_anchors))
    assert jnp.allclose(out_bf16.astype(jnp.float32), ref, atol=3e-2, rtol=3e-2)

    # Case 2: ragged H*W (13*13 = 169, not a multiple of 128) -> exercises the
    # masked tail writeback; OOB x garbage only lands in discarded rows.
    Hr = Wr = 13
    xr = jax.random.normal(k4, (B, C_in, Hr, Wr), dtype=jnp.float32)
    out_r = jax.block_until_ready(
        bbox_head_forward(xr, weight, bias, num_anchors))
    ref_r = reference(xr)
    assert out_r.shape == (B, Hr * Wr * num_anchors, 4)
    assert jnp.allclose(out_r, ref_r, atol=1e-4, rtol=1e-4)

    print("KERNEL_OK")
</pallas_src>

<mosaic_0001>
module attributes {stable_mosaic.version = 11 : i64} {
  func.func @_bbox_head_kernel(%arg0: i32, %arg1: i32, %arg2: memref<1x64x128xf32, #tpu.memory_space<vmem>>, %arg3: memref<12x64xf32, #tpu.memory_space<vmem>>, %arg4: memref<12x1xf32, #tpu.memory_space<vmem>>, %arg5: memref<1x128x12xf32, #tpu.memory_space<vmem>>) attributes {dimension_semantics = [#tpu.dimension_semantics<parallel>, #tpu.dimension_semantics<parallel>], iteration_bounds = array<i64: 2, 2>, scalar_prefetch = 0 : i64, scratch_operands = 0 : i64, tpu.core_type = #tpu.core_type<tc>, window_params = [{transform_indices = @transform_0, window_bounds = array<i64: 1, 64, 128>}, {pipeline_mode = #tpu.pipeline_mode<synchronous>, transform_indices = @transform_1, window_bounds = array<i64: 12, 64>}, {pipeline_mode = #tpu.pipeline_mode<synchronous>, transform_indices = @transform_2, window_bounds = array<i64: 12, 1>}, {transform_indices = @transform_3, window_bounds = array<i64: 1, 128, 12>}]} {
    %c0 = arith.constant 0 : index
    %c0_0 = arith.constant 0 : index
    %c0_1 = arith.constant 0 : index
    %0 = vector.load %arg2[%c0, %c0_0, %c0_1] : memref<1x64x128xf32, #tpu.memory_space<vmem>>, vector<1x64x128xf32>
    %1 = vector.shape_cast %0 : vector<1x64x128xf32> to vector<64x128xf32>
    %c0_2 = arith.constant 0 : index
    %c0_3 = arith.constant 0 : index
    %2 = vector.load %arg3[%c0_2, %c0_3] : memref<12x64xf32, #tpu.memory_space<vmem>>, vector<12x64xf32>
    %cst = arith.constant dense<0.000000e+00> : vector<12x128xf32>
    %3 = tpu.matmul %2, %1, %cst {dimension_numbers = #tpu.dot_dimension_numbers<[1], [0], [0], [1], [0, 0, 1, 1], [], []>} : vector<12x64xf32>, vector<64x128xf32>, vector<12x128xf32> -> vector<12x128xf32>
    %c0_4 = arith.constant 0 : index
    %c0_5 = arith.constant 0 : index
    %4 = vector.load %arg4[%c0_4, %c0_5] : memref<12x1xf32, #tpu.memory_space<vmem>>, vector<12x1xf32>
    %5 = vector.broadcast %4 : vector<12x1xf32> to vector<12x128xf32>
    %6 = arith.addf %3, %5 : vector<12x128xf32>
    %7 = tpu.transpose %6, [1, 0] : vector<12x128xf32> -> vector<128x12xf32>
    %c0_6 = arith.constant 0 : index
    %c0_7 = arith.constant 0 : index
    %c0_8 = arith.constant 0 : index
    %8 = vector.load %arg5[%c0_6, %c0_7, %c0_8] : memref<1x128x12xf32, #tpu.memory_space<vmem>>, vector<1x128x12xf32>
    %9 = vector.shape_cast %8 : vector<1x128x12xf32> to vector<128x12xf32>
    %10 = vector.shape_cast %7 : vector<128x12xf32> to vector<1x128x12xf32>
    tpu.vector_store %arg5[%c0_6, %c0_7, %c0_8], %10 {strides = array<i32>} : memref<1x128x12xf32, #tpu.memory_space<vmem>>, vector<1x128x12xf32>,
    return
  }
  func.func @transform_0(%arg0: i32, %arg1: i32) -> (i32, i32, i32) {
    %c0_i32 = arith.constant 0 : i32
    %c0_i32_0 = arith.constant 0 : i32
    return %arg0, %c0_i32, %arg1 : i32, i32, i32
  }
  func.func @transform_1(%arg0: i32, %arg1: i32) -> (i32, i32) {
    %c0_i32 = arith.constant 0 : i32
    %c0_i32_0 = arith.constant 0 : i32
    %c0_i32_1 = arith.constant 0 : i32
    return %c0_i32, %c0_i32_0 : i32, i32
  }
  func.func @transform_2(%arg0: i32, %arg1: i32) -> (i32, i32) {
    %c0_i32 = arith.constant 0 : i32
    %c0_i32_0 = arith.constant 0 : i32
    %c0_i32_1 = arith.constant 0 : i32
    return %c0_i32, %c0_i32_0 : i32, i32
  }
  func.func @transform_3(%arg0: i32, %arg1: i32) -> (i32, i32, i32) {
    %c0_i32 = arith.constant 0 : i32
    %c0_i32_0 = arith.constant 0 : i32
    return %arg0, %arg1, %c0_i32 : i32, i32, i32
  }
}

</mosaic_0001>

<bundles_post_ra>
// kernel: tpu_custom_call.1
= control target key start
LH: loop header
LB: loop body
LE: loop exit
PB: predicated region body
PF: predicated region fallthrough
CT: control target
= control target key end

     0   :  { %8 = vsyncpa [#allocation3], 0  ;;  %s892_s0 = inlined_call_operand.hbm [shape: f32[2,64,256], index: 0, kind: input, shape index: {}]   ;;  %s893_s1 = inlined_call_operand.vmem [shape: f32[12,64], index: 1, kind: input, shape index: {}]   ;;  %s894_s2 = inlined_call_operand.vmem [shape: f32[12,1], index: 2, kind: input, shape index: {}]   ;;  %s895_s3 = inlined_call_operand.vmem [shape: f32[2,256,12], index: 3, kind: output, shape index: {}]  }
   0x1   :  { %10 = vsyncpa [#allocation3 + $0x1], 0  ;;  %s710_s12 = smov 0   ;;  %s712_s13 = smov 0  }
   0x2   :  { %s714_s14 = smov 0   ;;  %s716_s15 = smov 0  }
   0x3   :  { %s718_s16 = smov 0   ;;  %s720_s17 = smov 0  }
   0x4   :  { %s722_s18 = smov 0   ;;  %s724_s19 = smov 0  }
   0x5 LB: > { %s467_s20 = sadd.s32 4294967295, %s683_s19   ;;  %s25_s21 = sadd.s32 1, %s675_s17  ;;  %s683_s19 = sphi %s724_s19, %s16_s19   ;;  %s679_s18 = sphi %s722_s18, %s905_s18   ;;  %s675_s17 = sphi %s720_s17, %s904_s17   ;;  %s671_s16 = sphi %s718_s16, %s903_s16   ;;  %s667_s15 = sphi %s716_s15, %s902_s15   ;;  %s663_s14 = sphi %s714_s14, %s901_s14   ;;  %s659_s13 = sphi %s712_s13, %s900_s13   ;;  %s655_s12 = sphi %s710_s12, %s899_s12  }
   0x6   : > { %p26_p0 = scmp.ge.s32.totalorder %s25_s21, 2  ;;  %s28_s22 = sadd.s32 1, %s679_s18 }
   0x7   : > { %s37_s23 = sadd.s32 1, %s663_s14  ;;  %p44_p1 = scmp.ne.s32.totalorder %s663_s14, %s659_s13 }
   0x8   : > { %s907_s21 = smov (%p26_p0, %s25_s21), 0  ;;  %s909_s22 = smov (!%p26_p0, %s28_s22), %s679_s18 }
   0x9   : > { %s33_s24 = ssub.s32 %s675_s17, %s907_s21  ;;  %p45_p2 = scmp.eq.s32.totalorder %s683_s19, 0 }
   0xa   : > { %p30_p3 = scmp.ge.s32.totalorder %s909_s22, 2  ;;  %p50_p4 = scmp.ne.s32.totalorder %s659_s13, %s655_s12 }
   0xb   : > { %p761_p5 = por %p45_p2, %p44_p1  ;;  %p51_p6 = scmp.eq.s32.totalorder %s467_s20, 0 }
   0xc   : > { %s911_s22 = smov (%p30_p3, %s909_s22), 0  ;;  %p518_p8 = scmp.lt.s32.totalorder %s683_s19, 4 }
   0xd   : > { %p767_p7 = por %p51_p6, %p50_p4  ;;  %s32_s27 = ssub.s32 %s679_s18, %s911_s22 }
   0xe   : > { %s34_s28 = sor.u32 %s33_s24, %s32_s27  ;;  %s150_s29 = sand.u32 1, %s663_s14  }
   0xf   : > { %p35_p9 = scmp.eq.s32.totalorder %s34_s28, 0  ;;  %s471_s30 = sshll.u32 %s150_s29, 6 }
  0x10   : > { %s472_s4 = sshll.u32 %s679_s18, 4  ;;  %s154_s8 = scalar_lea.vmem [#allocation2], %s471_s30 }
  0x11   : > { %s777_s5 = scalar_select %p35_p9, %s663_s14, %s37_s23  }
  0x12   : > { %s159_s6 = sadd.s32 %s675_s17, %s472_s4  ;;  %s162_s9 = sshll.u32 %s154_s8, 4  ;;  %s163_s9 = int_to_ptr.vmem [resolvable:$true] %s162_s9 }
  0x13   : > { %s473_s7 = sshll.u32 %s159_s6, 7  ;;  %p787_p10 = pnand %p518_p8, %p761_p5 }
  0x14   : > { %s161_s12 = scalar_lea.hbm %s892_s0, %s473_s7  ;;  %p474_p11 = scmp.ge.s32.totalorder %s683_s19, 1 }
  0x15   : > { %s151_s24 = scalar_lea.sflag [#allocation3], %s150_s29  ;;  %p591_p12 = pneg %p787_p10 }
  0x16   : > { %s602_s23 = scalar_lea.vmem %s163_s9, 1024  ;;  %s685_s27 = smov [#allocation2]  }
  0x17   : > { %p603_p13 = scmp.ne.s32.totalorder %s163_s9, %s602_s23  ;;  %s607_s28 = sshll.u32 %s685_s27, 4  ;;  %s608_s28 = int_to_ptr.vmem [resolvable:$false] %s607_s28 }
  0x18   : > { %s609_s30 = scalar_lea.vmem %s608_s28, 2048  ;;  %p610_p2 = scmp.lt.s32.totalorder %s163_s9, %s608_s28 }
  0x19   : > { %p605_p0 = pnand %p603_p13, %p591_p12  ;;  %p611_p3 = scmp.lt.s32.totalorder %s609_s30, %s602_s23 }
  0x1b   : > { %p606_p1 = pneg %p605_p0  ;;  %p612_p4 = por %p611_p3, %p610_p2 }
  0x1d   : > { %p613_p5 = pnand %p612_p4, %p606_p1 }
  0x1f   : > { %616 = shalt.err (!%p613_p5)
}
  0x20   : > { %s686_s25 = smov 256   ;;  %s687_s29 = smov 128  }
  0x21   : > { %s688_s4 = smov 8   ;;  %p170_p6 = scmp.lt.s32.totalorder %s683_s19, 5 }
  0x22   : > { %517 = dma.hbm_to_vmem [thread:$0]  (!%p787_p10), %s161_s12, 1024, %s163_s9, %s151_s24, %s686_s25, %s687_s29, %s688_s4  }
  0x23   : > { %p171_p8 = pnand %p474_p11, %p170_p6 }
  0x24   : > { %s176_s6 = sand.u32 (!%p171_p8), 1, %s659_s13  }
  0x25   : > { %174 = sbr.rel (%p171_p8) target bundleno = 443 (0x1bb), region = 32  ;;  %s475_s7 = sshll.u32 (!%p171_p8), %s176_s6, 6 }
  0x26   : > { %s177_s8 = scalar_lea.sflag (!%p171_p8), [#allocation3], %s176_s6  ;;  %s800_s10 = scalar_lea.vmem (!%p171_p8), [#allocation2], %s475_s7 }
  0x2a   : > { %650 = dma.done.wait (%p767_p7), %s177_s8, 1024  }
  0x2b   : > { %652 = vsyncadd (%p767_p7), %s177_s8, 4294966272  ;;  %v689_v0 = vmov 0   ;;  %v224_v1 = vld [vmem:[%s800_s10 + $0x38] sm:$0xff]  ;;  %v223_v2 = vld [vmem:[%s800_s10 + $0x30] sm:$0xff]  ;;  %vm239_vm0 = vcmask 523264   ;;  %s476_s28 = sshll.u32 %s667_s15, 4 }
  0x2c   : > { %588 = vset.pattern.permute.xlu0 %v689_v0  ;;  %493 = vmatprep.subr.mxu0 %v224_v1  ;;  %v222_v3 = vld [vmem:[%s800_s10 + $0x28] sm:$0xff]  ;;  %v225_v4 = vld [vmem:[%s893_s1] sm:$0xff]  ;;  %v220_v8 = vld [vmem:[%s800_s10 + $0x18] sm:$0xff]  ;;  %p208_p7 = scmp.lt.s32.totalorder %s671_s16, 1  ;;  %p210_p9 = scmp.lt.s32.totalorder %s476_s28, 31  ;;  %vm353_vm1 = vcmask 97280  }
  0x2d   : > { %494 = vmatpush3.msra.mxu0 %v224_v1  ;;  %509 = vmatprep.mubr.msk.f32.mxu0 %vm239_vm0, %v225_v4  ;;  %v227_v5 = vld [vmem:[%s894_s2] sm:$0xff]  ;;  %v228_v7 = vld [vmem:[%s894_s2 + $0x8] sm:$0xf]  ;;  %v219_v9 = vld [vmem:[%s800_s10 + $0x10] sm:$0xff] }
  0x2e   : > { %495 = vmatprep.subr.mxu0 %v223_v2  ;;  %v221_v6 = vld [vmem:[%s800_s10 + $0x20] sm:$0xff]  ;;  %231 = vperm.xlu0 %588, %v227_v5   ;;  %v218_v10 = vld [vmem:[%s800_s10 + $0x8] sm:$0xff]  ;;  %s913_s16 = smov (!%p208_p7, %s671_s16), 1  ;;  %s915_s28 = smov (!%p210_p9, %s476_s28), 31 }
  0x2f   : > { %496 = vmatpush3.msra.mxu0 %v223_v2  ;;  %v217_v11 = vld [vmem:[%s800_s10] sm:$0xff]  ;;  %v226_v12 = vld [vmem:[%s893_s1 + $0x8] sm:$0xf]  ;;  %s477_s30 = sshll.u32 %s913_s16, 5 }
  0x30   : > { %497 = vmatprep.subr.mxu0 %v222_v3  ;;  %s213_s25 = sadd.s32 %s477_s30, %s915_s28 }
  0x31   : > { %498 = vmatpush3.msra.mxu0 %v222_v3  ;;  %s478_s29 = sshll.u32 %s213_s25, 3 }
  0x32   : > { %499 = vmatprep.subr.mxu0 %v221_v6  ;;  %236 = vperm.xlu0 %588, %v228_v7   ;;  %s834_s7 = scalar_lea.vmem %s895_s3, %s478_s29 }
  0x33   : > { %500 = vmatpush3.msra.mxu0 %v221_v6 }
  0x34   : > { %501 = vmatprep.subr.mxu0 %v220_v8 }
  0x35   : > { %502 = vmatpush3.msra.mxu0 %v220_v8 }
  0x36   : > { %503 = vmatprep.subr.mxu0 %v219_v9 }
  0x37   : > { %504 = vmatpush3.msra.mxu0 %v219_v9 }
  0x38   : > { %505 = vmatprep.subr.mxu0 %v218_v10 }
  0x39   : > { %506 = vmatpush3.msra.mxu0 %v218_v10 }
  0x3a   : > { %507 = vmatprep.subr.mxu0 %v217_v11 }
  0x3b   : > { %508 = vmatpush3.msra.mxu0 %v217_v11 }
  0x3c   : > { %510 = vmatmul.mubr.msk.f32.vlgmr.msra.gmra.mxu0 %vm239_vm0, %v226_v12 }
  0xa9   : > { %v232_v13 = vpop.permute.xlu0 %231 }
  0xad   : > { %v237_v17 = vpop.permute.xlu0 %236 }
  0xfc   : > { %v511_v14 = vpop.f32.mrf.mxu0 }
  0xfd   : > { %v318_v18 = vadd.f32 %v511_v14, %v237_v17 }
  0xfe   : > { %v312_v15 = vpop.f32.mrf.mxu0 }
  0xff   : > { %v313_v16 = vadd.f32 %v312_v15, %v232_v13 }
 0x101   : > { %321 = vxpose.xlu1.b32.start [1/2] (short) %v313_v16, 128 }
 0x105   : > { %322 = vxpose.xlu1.b32.end [2/2] (short) %v318_v18, 128 }
 0x17d   : > { %v337_v19 = vpop.trf.xlu1 }
 0x17e   : > { %354 = vst.msk [vmem:[%s834_s7] sm:$0xff] %vm353_vm1, %v337_v19 }
 0x181   : > { %v338_v20 = vpop.trf.xlu1 }
 0x182   : > { %355 = vst.msk [vmem:[%s834_s7 + $0x8] sm:$0xff] %vm353_vm1, %v338_v20 }
 0x185   : > { %v339_v21 = vpop.trf.xlu1 }
 0x186   : > { %356 = vst.msk [vmem:[%s834_s7 + $0x10] sm:$0xff] %vm353_vm1, %v339_v21 }
 0x189   : > { %v340_v22 = vpop.trf.xlu1 }
 0x18a   : > { %357 = vst.msk [vmem:[%s834_s7 + $0x18] sm:$0xff] %vm353_vm1, %v340_v22 }
 0x18d   : > { %v341_v23 = vpop.trf.xlu1 }
 0x18e   : > { %358 = vst.msk [vmem:[%s834_s7 + $0x20] sm:$0xff] %vm353_vm1, %v341_v23 }
 0x191   : > { %v342_v24 = vpop.trf.xlu1 }
 0x192   : > { %359 = vst.msk [vmem:[%s834_s7 + $0x28] sm:$0xff] %vm353_vm1, %v342_v24 }
 0x195   : > { %v343_v25 = vpop.trf.xlu1 }
 0x196   : > { %360 = vst.msk [vmem:[%s834_s7 + $0x30] sm:$0xff] %vm353_vm1, %v343_v25 }
 0x199   : > { %v344_v26 = vpop.trf.xlu1 }
 0x19a   : > { %361 = vst.msk [vmem:[%s834_s7 + $0x38] sm:$0xff] %vm353_vm1, %v344_v26 }
 0x19d   : > { %v345_v27 = vpop.trf.xlu1 }
 0x19e   : > { %362 = vst.msk [vmem:[%s834_s7 + $0x40] sm:$0xff] %vm353_vm1, %v345_v27 }
 0x1a1   : > { %v346_v28 = vpop.trf.xlu1 }
 0x1a2   : > { %363 = vst.msk [vmem:[%s834_s7 + $0x48] sm:$0xff] %vm353_vm1, %v346_v28 }
 0x1a5   : > { %v347_v29 = vpop.trf.xlu1 }
 0x1a6   : > { %364 = vst.msk [vmem:[%s834_s7 + $0x50] sm:$0xff] %vm353_vm1, %v347_v29 }
 0x1a9   : > { %v348_v30 = vpop.trf.xlu1 }
 0x1aa   : > { %365 = vst.msk [vmem:[%s834_s7 + $0x58] sm:$0xff] %vm353_vm1, %v348_v30 }
 0x1ad   : > { %v349_v31 = vpop.trf.xlu1 }
 0x1ae   : > { %366 = vst.msk [vmem:[%s834_s7 + $0x60] sm:$0xff] %vm353_vm1, %v349_v31 }
 0x1b1   : > { %v350_v32 = vpop.trf.xlu1 }
 0x1b2   : > { %367 = vst.msk [vmem:[%s834_s7 + $0x68] sm:$0xff] %vm353_vm1, %v350_v32 }
 0x1b5   : > { %v351_v33 = vpop.trf.xlu1 }
 0x1b6   : > { %368 = vst.msk [vmem:[%s834_s7 + $0x70] sm:$0xff] %vm353_vm1, %v351_v33 }
 0x1b9   : > { %v352_v34 = vpop.trf.xlu1 }
 0x1ba   : > { %369 = vst.msk [vmem:[%s834_s7 + $0x78] sm:$0xff] %vm353_vm1, %v352_v34 }
 0x1bb PF: > { %s16_s19 = sadd.s32 1, %s683_s19   ;;  %s899_s12 = smov %s659_s13 }
 0x1bc   : > { %p13_p10 = scmp.ge.s32.totalorder %s16_s19, 6   ;;  %s900_s13 = smov %s663_s14 }
 0x1bd   : > { %s901_s14 = smov %s777_s5  ;;  %s902_s15 = smov %s675_s17 }
 0x1be   : > { %s903_s16 = smov %s679_s18  ;;  %s904_s17 = smov %s907_s21 }
 0x1bf   : > { %s905_s18 = smov %s911_s22  ;;  %15 = sbr.rel (!%p13_p10) target bundleno = 5 (0x5), region = 72 }
 0x1c4   :  { %400 = vsyncpa [#allocation3], 1 }
 0x1c5   :  { %402 = vsyncpa [#allocation3 + $0x1], 1 }

</bundles_post_ra>
